<compile_context>
chip_gen: v7x
topology: tpu7x:2x2x1
jax: 0.10.0
libtpu: 0.0.40
codegen_flags: <defaults>
</compile_context>

<pallas_src>
import functools

import jax
import jax.numpy as jnp
from jax.experimental import pallas as pl
from jax.experimental.pallas import tpu as pltpu


def sdpa_kernel(q_ref, k_ref, v_ref, mask_ref, out_ref, attn_ref, *,
                inv_temperature):
    # TODO(synk): nn.Dropout(attn_dropout=0.1) is identity here (eval mode).
    q = q_ref[...]                      # [N, Lq, Dk]
    k = k_ref[...]                      # [N, Lk, Dk]
    v = v_ref[...]                      # [N, Lk, Dv]

    # attn = bmm(q, k.transpose(1, 2)) / temperature
    # One batched MXU einsum for all head/batch entries (no per-head slicing).
    s = jnp.einsum('nqd,nkd->nqk', q, k,
                   preferred_element_type=jnp.float32) * inv_temperature

    # attn = attn.masked_fill(mask, -inf)
    s = jnp.where(mask_ref[...] != 0.0, -jnp.inf, s)

    # softmax(dim=2), numerically stabilized. Exact reciprocal: attn is a
    # kernel output, keep rows normalized (review correctness concern).
    s = s - jnp.max(s, axis=-1, keepdims=True)
    e = jnp.exp(s)
    attn = e * (1.0 / jnp.sum(e, axis=-1, keepdims=True))
    attn_ref[...] = attn                # single bulk store, no concat

    # output = bmm(attn, v)
    out_ref[...] = jnp.einsum('nqk,nkd->nqd', attn, v,
                              preferred_element_type=jnp.float32)


def scaled_dot_product_attention(q, k, v, temperature, mask=None):
    n, lq, _ = q.shape
    _, lk, dv = v.shape
    mask_f = (jnp.zeros((n, lq, lk), jnp.float32) if mask is None
              else mask.astype(jnp.float32))
    vmem = pl.BlockSpec(memory_space=pltpu.MemorySpace.VMEM)
    kernel = functools.partial(sdpa_kernel,
                               inv_temperature=1.0 / float(temperature))
    out, attn = pl.pallas_call(
        kernel,
        out_shape=(jax.ShapeDtypeStruct((n, lq, dv), jnp.float32),
                   jax.ShapeDtypeStruct((n, lq, lk), jnp.float32)),
        in_specs=[vmem, vmem, vmem, vmem],
        out_specs=(vmem, vmem),
    )(q, k, v, mask_f)
    return out, attn


def reference(q, k, v, temperature, mask):
    # Pure-JAX mirror of the PyTorch forward.
    s = jnp.einsum('nqd,nkd->nqk', q, k, precision='highest') / temperature
    if mask is not None:
        s = jnp.where(mask != 0.0, -jnp.inf, s)
    attn = jax.nn.softmax(s, axis=-1)
    out = jnp.einsum('nqk,nkd->nqd', attn, v, precision='highest')
    return out, attn


if __name__ == "__main__":
    # Shapes implied by the transformer wrapper: leading dim n = n_head * batch.
    N_HEAD, BATCH = 4, 2
    N = N_HEAD * BATCH
    LEN_Q, LEN_K = 8, 16
    D_K = D_V = 16
    TEMPERATURE = float(D_K) ** 0.5

    key = jax.random.PRNGKey(0)
    kq, kk, kv = jax.random.split(key, 3)
    q = jax.random.normal(kq, (N, LEN_Q, D_K), jnp.float32)
    k = jax.random.normal(kk, (N, LEN_K, D_K), jnp.float32)
    v = jax.random.normal(kv, (N, LEN_K, D_V), jnp.float32)

    # Padding-style mask (1 = masked): later head*batch entries mask the last 4
    # key positions; no row is fully masked (fully-masked rows are NaN in torch too).
    mask = (jnp.zeros((N, LEN_Q, LEN_K), jnp.float32)
            .at[N // 2:, :, LEN_K - 4:].set(1.0))

    out, attn = scaled_dot_product_attention(q, k, v, TEMPERATURE, mask)
    out, attn = jax.block_until_ready((out, attn))

    out_ref, attn_ref = reference(q, k, v, TEMPERATURE, mask)
    assert jnp.allclose(attn, attn_ref, atol=1e-4, rtol=1e-4), "attention mismatch"
    assert jnp.allclose(out, out_ref, atol=1e-4, rtol=1e-4), "output mismatch"

    print("KERNEL_OK")
</pallas_src>

<mosaic_0001>
module attributes {stable_mosaic.version = 11 : i64} {
  func.func @sdpa_kernel(%arg0: memref<8x8x16xf32, #tpu.memory_space<vmem>>, %arg1: memref<8x16x16xf32, #tpu.memory_space<vmem>>, %arg2: memref<8x16x16xf32, #tpu.memory_space<vmem>>, %arg3: memref<8x8x16xf32, #tpu.memory_space<vmem>>, %arg4: memref<8x8x16xf32, #tpu.memory_space<vmem>>, %arg5: memref<8x8x16xf32, #tpu.memory_space<vmem>>) attributes {dimension_semantics = [], scalar_prefetch = 0 : i64, scratch_operands = 0 : i64, tpu.core_type = #tpu.core_type<tc>} {
    %c0 = arith.constant 0 : index
    %c0_0 = arith.constant 0 : index
    %c0_1 = arith.constant 0 : index
    %0 = vector.load %arg0[%c0, %c0_0, %c0_1] : memref<8x8x16xf32, #tpu.memory_space<vmem>>, vector<8x8x16xf32>
    %c0_2 = arith.constant 0 : index
    %c0_3 = arith.constant 0 : index
    %c0_4 = arith.constant 0 : index
    %1 = vector.load %arg1[%c0_2, %c0_3, %c0_4] : memref<8x16x16xf32, #tpu.memory_space<vmem>>, vector<8x16x16xf32>
    %c0_5 = arith.constant 0 : index
    %c0_6 = arith.constant 0 : index
    %c0_7 = arith.constant 0 : index
    %2 = vector.load %arg2[%c0_5, %c0_6, %c0_7] : memref<8x16x16xf32, #tpu.memory_space<vmem>>, vector<8x16x16xf32>
    "tpu.trace_start"() <{level = 10 : i32, message = "nqd,nkd->nqk"}> : () -> ()
    %cst = arith.constant dense<0.000000e+00> : vector<8x8x16xf32>
    %3 = tpu.matmul %0, %1, %cst {dimension_numbers = #tpu.dot_dimension_numbers<[2], [2], [1], [1], [0, 0, 0, 1, 1, 1], [0], [0]>} : vector<8x8x16xf32>, vector<8x16x16xf32>, vector<8x8x16xf32> -> vector<8x8x16xf32>
    "tpu.trace_stop"() : () -> ()
    %cst_8 = arith.constant 2.500000e-01 : f32
    %4 = vector.broadcast %cst_8 : f32 to vector<8x8x16xf32>
    %5 = arith.mulf %3, %4 : vector<8x8x16xf32>
    %c0_9 = arith.constant 0 : index
    %c0_10 = arith.constant 0 : index
    %c0_11 = arith.constant 0 : index
    %6 = vector.load %arg3[%c0_9, %c0_10, %c0_11] : memref<8x8x16xf32, #tpu.memory_space<vmem>>, vector<8x8x16xf32>
    %cst_12 = arith.constant 0.000000e+00 : f32
    %7 = vector.broadcast %cst_12 : f32 to vector<8x8x16xf32>
    %8 = arith.cmpf one, %6, %7 : vector<8x8x16xf32>
    %cst_13 = arith.constant 0xFF800000 : f32
    %9 = vector.broadcast %cst_13 : f32 to vector<8x8x16xf32>
    %10 = arith.select %8, %9, %5 : vector<8x8x16xi1>, vector<8x8x16xf32>
    %cst_14 = arith.constant dense<0xFF800000> : vector<8x8xf32>
    %11 = vector.multi_reduction <maximumf>, %10, %cst_14 [2] : vector<8x8x16xf32> to vector<8x8xf32>
    %12 = vector.shape_cast %11 : vector<8x8xf32> to vector<8x8x1xf32>
    %13 = vector.broadcast %12 : vector<8x8x1xf32> to vector<8x8x16xf32>
    %14 = arith.subf %10, %13 : vector<8x8x16xf32>
    %15 = math.exp %14 : vector<8x8x16xf32>
    %cst_15 = arith.constant dense<0.000000e+00> : vector<8x8xf32>
    %16 = vector.multi_reduction <add>, %15, %cst_15 [2] : vector<8x8x16xf32> to vector<8x8xf32>
    %17 = vector.shape_cast %16 : vector<8x8xf32> to vector<8x8x1xf32>
    %cst_16 = arith.constant 1.000000e+00 : f32
    %18 = vector.broadcast %cst_16 : f32 to vector<8x8x1xf32>
    %19 = arith.divf %18, %17 : vector<8x8x1xf32>
    %20 = vector.broadcast %19 : vector<8x8x1xf32> to vector<8x8x16xf32>
    %21 = arith.mulf %15, %20 : vector<8x8x16xf32>
    %c0_17 = arith.constant 0 : index
    %c0_18 = arith.constant 0 : index
    %c0_19 = arith.constant 0 : index
    %22 = vector.load %arg5[%c0_17, %c0_18, %c0_19] : memref<8x8x16xf32, #tpu.memory_space<vmem>>, vector<8x8x16xf32>
    tpu.vector_store %arg5[%c0_17, %c0_18, %c0_19], %21 {strides = array<i32>} : memref<8x8x16xf32, #tpu.memory_space<vmem>>, vector<8x8x16xf32>,
    "tpu.trace_start"() <{level = 10 : i32, message = "nqk,nkd->nqd"}> : () -> ()
    %cst_20 = arith.constant dense<0.000000e+00> : vector<8x8x16xf32>
    %23 = tpu.matmul %21, %2, %cst_20 {dimension_numbers = #tpu.dot_dimension_numbers<[2], [1], [1], [2], [0, 0, 0, 1, 1, 2], [0], [0]>} : vector<8x8x16xf32>, vector<8x16x16xf32>, vector<8x8x16xf32> -> vector<8x8x16xf32>
    "tpu.trace_stop"() : () -> ()
    %c0_21 = arith.constant 0 : index
    %c0_22 = arith.constant 0 : index
    %c0_23 = arith.constant 0 : index
    %24 = vector.load %arg4[%c0_21, %c0_22, %c0_23] : memref<8x8x16xf32, #tpu.memory_space<vmem>>, vector<8x8x16xf32>
    tpu.vector_store %arg4[%c0_21, %c0_22, %c0_23], %23 {strides = array<i32>} : memref<8x8x16xf32, #tpu.memory_space<vmem>>, vector<8x8x16xf32>,
    return
  }
}

</mosaic_0001>

<bundles_post_ra>
// kernel: tpu_custom_call.1
= control target key start
LH: loop header
LB: loop body
LE: loop exit
PB: predicated region body
PF: predicated region fallthrough
CT: control target
= control target key end

     0   :  { %11 = vsyncpa [#allocation3], 0  ;;  %s2236_s0 = inlined_call_operand.hbm [shape: f32[8,8,16], index: 0, kind: input, shape index: {}]   ;;  %s2237_s1 = inlined_call_operand.hbm [shape: f32[8,16,16], index: 1, kind: input, shape index: {}]   ;;  %s2238_s2 = inlined_call_operand.hbm [shape: f32[8,16,16], index: 2, kind: input, shape index: {}]   ;;  %s2239_s3 = inlined_call_operand.hbm [shape: f32[8,8,16], index: 3, kind: input, shape index: {}]   ;;  %s2240_s4 = inlined_call_operand.hbm [shape: f32[8,8,16], index: 4, kind: output, shape index: {0}]   ;;  %s2241_s5 = inlined_call_operand.hbm [shape: f32[8,8,16], index: 5, kind: output, shape index: {1}]  }
   0x1   :  { %12 = vsyncpa [#allocation6], 0 }
   0x2   :  { %13 = vsyncpa [#allocation9], 0 }
   0x3   :  { %14 = vsyncpa [#allocation4], 0 }
   0x4   :  { %15 = vsyncpa [#allocation12], 0  ;;  %s1945_s18 = smov [#allocation5]   ;;  %s1946_s20 = smov [#allocation2]  }
   0x5   :  { %s33_s19 = sshll.u32 %s1945_s18, 4  ;;  %s21_s21 = sshll.u32 %s1946_s20, 4  ;;  %s34_s19 = int_to_ptr.vmem [resolvable:$true] %s33_s19  ;;  %s1986_s21 = int_to_ptr.vmem [resolvable:$true] %s21_s21 }
   0x6   :  { %s1803_s24 = scalar_lea.hbm %s2237_s1, 2048 }
   0x7   :  { %p1804_p0 = scmp.ne.s32.totalorder %s2237_s1, %s1803_s24  ;;  %p1807_p1 = scmp.lt.u32.totalorder %s1803_s24, %s2237_s1 }
   0x9   :  { %p1809_p2 = pnand %p1807_p1, %p1804_p0 }
   0xb   :  { %1812 = shalt.err (!%p1809_p2)
}
   0xc   :  { %s1813_s29 = scalar_lea.vmem %s34_s19, 2048  ;;  %p1818_p4 = scmp.lt.s32.totalorder %s34_s19, %s34_s19 }
   0xd   :  { %p1814_p3 = scmp.ne.s32.totalorder %s34_s19, %s1813_s29  ;;  %p1819_p5 = scmp.lt.s32.totalorder %s1813_s29, %s1813_s29 }
   0xf   :  { %p1820_p6 = por %p1819_p5, %p1818_p4 }
  0x11   :  { %p1821_p7 = pnand %p1820_p6, %p1814_p3 }
  0x13   :  { %1824 = shalt.err (!%p1821_p7)
}
  0x14   :  { %s1947_s30 = smov 128   ;;  %s1948_s6 = smov 8  }
  0x15   :  { %39 = dma.hbm_to_vmem [thread:$0]  %s2237_s1, 2048, %s34_s19, [#allocation6], %s1947_s30, %s1947_s30, %s1948_s6  }
  0x16   :  { %s1825_s11 = scalar_lea.hbm %s2236_s0, 1024 }
  0x17   :  { %p1826_p8 = scmp.ne.s32.totalorder %s2236_s0, %s1825_s11  ;;  %p1829_p9 = scmp.lt.u32.totalorder %s1825_s11, %s2236_s0 }
  0x19   :  { %p1831_p10 = pnand %p1829_p9, %p1826_p8 }
  0x1b   :  { %1834 = shalt.err (!%p1831_p10)
}
  0x1c   :  { %s1835_s16 = scalar_lea.vmem %s1986_s21, 1024  ;;  %p1840_p12 = scmp.lt.s32.totalorder %s1986_s21, %s1986_s21 }
  0x1d   :  { %p1836_p11 = scmp.ne.s32.totalorder %s1986_s21, %s1835_s16  ;;  %p1841_p13 = scmp.lt.s32.totalorder %s1835_s16, %s1835_s16 }
  0x1f   :  { %p1842_p0 = por %p1841_p13, %p1840_p12 }
  0x21   :  { %p1843_p1 = pnand %p1842_p0, %p1836_p11 }
  0x23   :  { %1846 = shalt.err (!%p1843_p1)
}
  0x24   :  { %27 = dma.hbm_to_vmem [thread:$0]  %s2236_s0, 1024, %s1986_s21, [#allocation3], %s1947_s30, %s1947_s30, %s1948_s6  }
  0x25   :  { %s1949_s18 = smov [#allocation7]   ;;  %s1950_s20 = smov [#allocation8]  }
  0x26   :  { %s45_s19 = sshll.u32 %s1949_s18, 4  ;;  %s57_s22 = sshll.u32 %s1950_s20, 4  ;;  %s46_s19 = int_to_ptr.vmem [resolvable:$true] %s45_s19  ;;  %s2023_s22 = int_to_ptr.vmem [resolvable:$true] %s57_s22 }
  0x27   :  { %s1847_s25 = scalar_lea.hbm %s2238_s2, 2048 }
  0x28   :  { %p1848_p2 = scmp.ne.s32.totalorder %s2238_s2, %s1847_s25  ;;  %p1851_p3 = scmp.lt.u32.totalorder %s1847_s25, %s2238_s2 }
  0x2a   :  { %p1853_p4 = pnand %p1851_p3, %p1848_p2 }
  0x2c   :  { %1856 = shalt.err (!%p1853_p4)
}
  0x2d   :  { %s1857_s0 = scalar_lea.vmem %s46_s19, 2048  ;;  %p1862_p6 = scmp.lt.s32.totalorder %s46_s19, %s46_s19 }
  0x2e   :  { %p1858_p5 = scmp.ne.s32.totalorder %s46_s19, %s1857_s0  ;;  %p1863_p7 = scmp.lt.s32.totalorder %s1857_s0, %s1857_s0 }
  0x30   :  { %p1864_p8 = por %p1863_p7, %p1862_p6 }
  0x32   :  { %p1865_p9 = pnand %p1864_p8, %p1858_p5 }
  0x34   :  { %1868 = shalt.err (!%p1865_p9)
}
  0x35   :  { %51 = dma.hbm_to_vmem [thread:$0]  %s2238_s2, 2048, %s46_s19, [#allocation6], %s1947_s30, %s1947_s30, %s1948_s6  }
  0x36   :  { %s1869_s10 = scalar_lea.hbm %s2239_s3, 1024 }
  0x37   :  { %p1870_p10 = scmp.ne.s32.totalorder %s2239_s3, %s1869_s10  ;;  %p1873_p11 = scmp.lt.u32.totalorder %s1869_s10, %s2239_s3 }
  0x39   :  { %p1875_p12 = pnand %p1873_p11, %p1870_p10 }
  0x3b   :  { %1878 = shalt.err (!%p1875_p12)
}
  0x3c   :  { %s1879_s15 = scalar_lea.vmem %s2023_s22, 1024  ;;  %p1884_p0 = scmp.lt.s32.totalorder %s2023_s22, %s2023_s22 }
  0x3d   :  { %p1880_p13 = scmp.ne.s32.totalorder %s2023_s22, %s1879_s15  ;;  %p1885_p1 = scmp.lt.s32.totalorder %s1879_s15, %s1879_s15 }
  0x3f   :  { %p1886_p2 = por %p1885_p1, %p1884_p0 }
  0x41   :  { %p1887_p3 = pnand %p1886_p2, %p1880_p13 }
  0x43   :  { %1890 = shalt.err (!%p1887_p3)
}
  0x44   :  { %63 = dma.hbm_to_vmem [thread:$0]  %s2239_s3, 1024, %s2023_s22, [#allocation9], %s1947_s30, %s1947_s30, %s1948_s6  }
  0x45   :  { %1935 = dma.done.wait [#allocation3], 1024  }
  0x46   :  { %1936 = vsyncadd [#allocation3], 4294966272 }
  0x47   :  { %1937 = dma.done.wait [#allocation6], 4096  }
  0x48   :  { %1938 = vsyncadd [#allocation6], 4294963200 }
  0x49   :  { %1939 = dma.done.wait [#allocation9], 1024  }
  0x4a   :  { %1940 = vsyncadd [#allocation9], 4294966272  ;;  %v1951_v0 = vmov 0.0|0.0   ;;  %vm1952_vm0 = vmmov 0   ;;  %v1953_v1 = vmov 0.0   ;;  %vm116_vm1 = vcmask 130048  }
  0x4b   :  { %1704 = vmatprep.subr.bf16.mxu0 %v1951_v0  ;;  %1708 = vmatprep.subr.bf16.mxu1 %v1951_v0  ;;  %vm2068_vm2 = vmpackc.low %vm116_vm1, %vm116_vm1  ;;  %v84_v3 = vld [vmem:[#allocation5] sm:$0xff]  ;;  %v85_v4 = vld [vmem:[#allocation5 + $0x8] sm:$0xff]  ;;  %s1954_s3 = smov [#allocation11]  }
  0x4c   :  { %1596 = vmatprep.mubr.msk.f32.mxu0 %vm1952_vm0, %v1953_v1  ;;  %1603 = vmatprep.mubr.msk.f32.mxu1 %vm1952_vm0, %v1953_v1  ;;  %v86_v5 = vld [vmem:[#allocation5 + $0x10] sm:$0xff]  ;;  %v1705_v6 = vpack.c.bf16 %v85_v4, %v84_v3  ;;  %v87_v7 = vld [vmem:[#allocation5 + $0x18] sm:$0xff]  ;;  %v88_v9 = vld [vmem:[#allocation5 + $0x20] sm:$0xff]  ;;  %s1494_s1 = sshll.u32 %s1954_s3, 4  ;;  %s1495_s1 = int_to_ptr.vmem [resolvable:$true] %s1494_s1 }
  0x4d   :  { %v1709_v8 = vpack.c.bf16 %v87_v7, %v86_v5  ;;  %v89_v10 = vld [vmem:[#allocation5 + $0x28] sm:$0xff]  ;;  %v90_v11 = vld [vmem:[#allocation5 + $0x30] sm:$0xff]  ;;  %v91_v12 = vld [vmem:[#allocation5 + $0x38] sm:$0xff]  ;;  %s1891_s17 = scalar_lea.vmem %s1495_s1, 1024  ;;  %p1896_p5 = scmp.lt.s32.totalorder %s1495_s1, %s1495_s1 }
  0x4e   :  { %1707 = vmatpush3.bf16.xpose.msk.msra.mxu0 %vm2068_vm2, %v1705_v6  ;;  %v76_v13 = vld [vmem:[#allocation2] sm:$0xff]  ;;  %v1713_v14 = vpack.c.bf16 %v89_v10, %v88_v9  ;;  %v77_v15 = vld [vmem:[#allocation2 + $0x8] sm:$0xff]  ;;  %v1717_v16 = vpack.c.bf16 %v91_v12, %v90_v11  ;;  %v94_v19 = vld [vmem:[#allocation5 + $0x50] sm:$0xff]  ;;  %p1892_p4 = scmp.ne.s32.totalorder %s1495_s1, %s1891_s17  ;;  %p1897_p6 = scmp.lt.s32.totalorder %s1891_s17, %s1891_s17 }
  0x4f   :  { %1711 = vmatpush3.bf16.xpose.msk.msra.mxu1 %vm2068_vm2, %v1709_v8  ;;  %1712 = vmatprep.subr.bf16.mxu0 %v1951_v0  ;;  %v92_v17 = vld [vmem:[#allocation5 + $0x40] sm:$0xff]  ;;  %v93_v18 = vld [vmem:[#allocation5 + $0x48] sm:$0xff]  ;;  %v95_v20 = vld [vmem:[#allocation5 + $0x58] sm:$0xff] }
  0x50   :  { %1716 = vmatprep.subr.bf16.mxu1 %v1951_v0  ;;  %v78_v21 = vld [vmem:[#allocation2 + $0x10] sm:$0xff]  ;;  %v1721_v22 = vpack.c.bf16 %v93_v18, %v92_v17  ;;  %v79_v23 = vld [vmem:[#allocation2 + $0x18] sm:$0xff]  ;;  %v1725_v24 = vpack.c.bf16 %v95_v20, %v94_v19  ;;  %v96_v25 = vld [vmem:[#allocation5 + $0x60] sm:$0xff]  ;;  %p1898_p7 = por %p1897_p6, %p1896_p5 }
  0x51   :  { %v97_v26 = vld [vmem:[#allocation5 + $0x68] sm:$0xff]  ;;  %v98_v27 = vld [vmem:[#allocation5 + $0x70] sm:$0xff]  ;;  %v99_v28 = vld [vmem:[#allocation5 + $0x78] sm:$0xff] }
  0x52   :  { %v80_v29 = vld [vmem:[#allocation2 + $0x20] sm:$0xff]  ;;  %v1729_v30 = vpack.c.bf16 %v97_v26, %v96_v25  ;;  %v81_v31 = vld [vmem:[#allocation2 + $0x28] sm:$0xff]  ;;  %v1733_v32 = vpack.c.bf16 %v99_v28, %v98_v27  ;;  %v82_v33 = vld [vmem:[#allocation2 + $0x30] sm:$0xff]  ;;  %p1899_p8 = pnand %p1898_p7, %p1892_p4 }
  0x53   :  { %v83_v34 = vld [vmem:[#allocation2 + $0x38] sm:$0xff]  ;;  %v757_v35 = vld [vmem:[#allocation8] sm:$0xff]  ;;  %v758_v36 = vld [vmem:[#allocation8 + $0x8] sm:$0xff] }
  0x54   :  { %vm765_vm3 = vcmp.ne.f32.partialorder %v757_v35, 0.0  ;;  %vm766_vm4 = vcmp.ne.f32.partialorder %v758_v36, 0.0  ;;  %v759_v46 = vld [vmem:[#allocation8 + $0x10] sm:$0xff]  ;;  %v760_v47 = vld [vmem:[#allocation8 + $0x18] sm:$0xff]  ;;  %v761_v58 = vld [vmem:[#allocation8 + $0x20] sm:$0xff] }
  0x55   :  { %1597 = vmatmul.mubr.msk.f32.vlgmr.msra.gmra.mrb[0].mxu0 %vm116_vm1, %v76_v13  ;;  %vm767_vm5 = vcmp.ne.f32.partialorder %v759_v46, 0.0  ;;  %vm768_vm6 = vcmp.ne.f32.partialorder %v760_v47, 0.0  ;;  %v762_v59 = vld [vmem:[#allocation8 + $0x28] sm:$0xff]  ;;  %vm769_vm7 = vcmp.ne.f32.partialorder %v761_v58, 0.0  ;;  %v763_v9 = vld [vmem:[#allocation8 + $0x30] sm:$0xff]  ;;  %v764_v10 = vld [vmem:[#allocation8 + $0x38] sm:$0xff] }
  0x56   :  { %1604 = vmatmul.mubr.msk.f32.vlgmr.msra.gmra.mrb[0].mxu1 %vm116_vm1, %v77_v15  ;;  %1715 = vmatpush3.bf16.xpose.msk.msra.mxu0 %vm2068_vm2, %v1713_v14  ;;  %vm770_vm8 = vcmp.ne.f32.partialorder %v762_v59, 0.0  ;;  %vm771_vm9 = vcmp.ne.f32.partialorder %v763_v9, 0.0  ;;  %vm772_vm10 = vcmp.ne.f32.partialorder %v764_v10, 0.0  ;;  %v100_v58 = vld [vmem:[#allocation7] sm:$0xff]  ;;  %v101_v59 = vld [vmem:[#allocation7 + $0x8] sm:$0xff] }
  0x57   :  { %1719 = vmatpush3.bf16.xpose.msk.msra.mxu1 %vm2068_vm2, %v1717_v16  ;;  %1610 = vmatprep.mubr.msk.f32.mxu0 %vm1952_vm0, %v1953_v1  ;;  %v105_v9 = vld [vmem:[#allocation7 + $0x28] sm:$0xff] }
  0x58   :  { %1617 = vmatprep.mubr.msk.f32.mxu1 %vm1952_vm0, %v1953_v1  ;;  %1720 = vmatprep.subr.bf16.mxu0 %v1951_v0 }
  0x59   :  { %1724 = vmatprep.subr.bf16.mxu1 %v1951_v0 }
  0x5d   :  { %1611 = vmatmul.mubr.msk.f32.vlgmr.msra.gmra.mrb[2].mxu0 %vm116_vm1, %v78_v21 }
  0x5e   :  { %1618 = vmatmul.mubr.msk.f32.vlgmr.msra.gmra.mrb[2].mxu1 %vm116_vm1, %v79_v23  ;;  %1723 = vmatpush3.bf16.xpose.msk.msra.mxu0 %vm2068_vm2, %v1721_v22 }
  0x5f   :  { %1727 = vmatpush3.bf16.xpose.msk.msra.mxu1 %vm2068_vm2, %v1725_v24  ;;  %1624 = vmatprep.mubr.msk.f32.mxu0 %vm1952_vm0, %v1953_v1 }
  0x60   :  { %1631 = vmatprep.mubr.msk.f32.mxu1 %vm1952_vm0, %v1953_v1  ;;  %1728 = vmatprep.subr.bf16.mxu0 %v1951_v0 }
  0x61   :  { %1732 = vmatprep.subr.bf16.mxu1 %v1951_v0 }
  0x65   :  { %1625 = vmatmul.mubr.msk.f32.vlgmr.msra.gmra.mrb[4].mxu0 %vm116_vm1, %v80_v29 }
  0x66   :  { %1632 = vmatmul.mubr.msk.f32.vlgmr.msra.gmra.mrb[4].mxu1 %vm116_vm1, %v81_v31  ;;  %1731 = vmatpush3.bf16.xpose.msk.msra.mxu0 %vm2068_vm2, %v1729_v30 }
  0x67   :  { %1735 = vmatpush3.bf16.xpose.msk.msra.mxu1 %vm2068_vm2, %v1733_v32  ;;  %1638 = vmatprep.mubr.msk.f32.mxu0 %vm1952_vm0, %v1953_v1 }
  0x68   :  { %1645 = vmatprep.mubr.msk.f32.mxu1 %vm1952_vm0, %v1953_v1  ;;  %1736 = vmatprep.subr.bf16.mxu0 %v1951_v0 }
  0x69   :  { %1739 = vmatprep.subr.bf16.mxu1 %v1951_v0 }
  0x6d   :  { %1639 = vmatmul.mubr.msk.f32.vlgmr.msra.gmra.mrb[6].mxu0 %vm116_vm1, %v82_v33 }
  0x6e   :  { %1646 = vmatmul.mubr.msk.f32.vlgmr.msra.gmra.mrb[6].mxu1 %vm116_vm1, %v83_v34  ;;  %1652 = vmatprep.mubr.msk.f32.mxu0 %vm1952_vm0, %v1953_v1 }
  0x6f   :  { %1659 = vmatprep.mubr.msk.f32.mxu1 %vm1952_vm0, %v1953_v1 }
 0x128   :  { %v192_v37 = vpop.f32.mrb[0].mxu0 }
 0x129   :  { %v749_v38 = vmul.f32 0.25, %v192_v37  ;;  %v271_v39 = vpop.f32.mrb[0].mxu1  ;;  %v1598_v40 = vpop.f32.mrb[1].mxu0 }
 0x12a   :  { %v750_v41 = vmul.f32 0.25, %v271_v39  ;;  %v1605_v42 = vpop.f32.mrb[1].mxu1 }
 0x12b   :  { %v773_v43 = vsel %vm765_vm3, -inf, %v749_v38 }
 0x12c   :  { %v781_v44 = vsel %vm116_vm1, %v773_v43, -inf  ;;  %v774_v45 = vsel %vm766_vm4, -inf, %v750_v41 }
 0x12d   :  { %782 = vmax.xlane.f32.xlu0 %v781_v44  ;;  %v784_v49 = vsel %vm116_vm1, %v774_v45, -inf }
 0x130   :  { %v350_v48 = vpop.f32.mrb[2].mxu0 }
 0x131   :  { %v751_v50 = vmul.f32 0.25, %v350_v48  ;;  %v429_v51 = vpop.f32.mrb[2].mxu1  ;;  %785 = vmax.xlane.f32.xlu0 %v784_v49  ;;  %v1612_v52 = vpop.f32.mrb[3].mxu0 }
 0x132   :  { %v752_v53 = vmul.f32 0.25, %v429_v51  ;;  %v1619_v54 = vpop.f32.mrb[3].mxu1 }
 0x133   :  { %v775_v55 = vsel %vm767_vm5, -inf, %v751_v50 }
 0x134   :  { %v787_v56 = vsel %vm116_vm1, %v775_v55, -inf  ;;  %v776_v57 = vsel %vm768_vm6, -inf, %v752_v53 }
 0x135   :  { %788 = vmax.xlane.f32.xlu1 %v787_v56  ;;  %v790_v61 = vsel %vm116_vm1, %v776_v57, -inf }
 0x138   :  { %v508_v60 = vpop.f32.mrb[4].mxu0 }
 0x139   :  { %v753_v62 = vmul.f32 0.25, %v508_v60  ;;  %v587_v63 = vpop.f32.mrb[4].mxu1  ;;  %791 = vmax.xlane.f32.xlu1 %v790_v61  ;;  %v1626_v2 = vpop.f32.mrb[5].mxu0 }
 0x13a   :  { %v754_v3 = vmul.f32 0.25, %v587_v63  ;;  %v1633_v4 = vpop.f32.mrb[5].mxu1  ;;  %v102_v2 = vld [vmem:[#allocation7 + $0x10] sm:$0xff] }
 0x13b   :  { %v777_v5 = vsel %vm769_vm7, -inf, %v753_v62  ;;  %v1737_v62 = vpack.c.bf16 %v101_v59, %v100_v58 }
 0x13c   :  { %v778_v6 = vsel %vm770_vm8, -inf, %v754_v3  ;;  %v793_v7 = vsel %vm116_vm1, %v777_v5, -inf  ;;  %v103_v3 = vld [vmem:[#allocation7 + $0x18] sm:$0xff] }
 0x13d   :  { %v796_v8 = vsel %vm116_vm1, %v778_v6, -inf  ;;  %794 = vmax.xlane.f32.xlu0 %v793_v7  ;;  %1738 = vmatpush3.bf16.msra.mxu0 %v1737_v62  ;;  %v1740_v4 = vpack.c.bf16 %v103_v3, %v102_v2 }
 0x13e   :  { %797 = vmax.xlane.f32.xlu1 %v796_v8  ;;  %1742 = vmatprep.subr.bf16.mxu0 %v1951_v0  ;;  %v104_v8 = vld [vmem:[#allocation7 + $0x20] sm:$0xff] }
 0x13f   :  { %1741 = vmatpush3.bf16.msra.mxu1 %v1740_v4 }
 0x140   :  { %v666_v11 = vpop.f32.mrb[6].mxu0  ;;  %1745 = vmatprep.subr.bf16.mxu1 %v1951_v0 }
 0x141   :  { %v755_v12 = vmul.f32 0.25, %v666_v11  ;;  %v745_v13 = vpop.f32.mrb[6].mxu1  ;;  %v1640_v14 = vpop.f32.mrb[7].mxu0  ;;  %v1743_v11 = vpack.c.bf16 %v105_v9, %v104_v8 }
 0x142   :  { %v756_v15 = vmul.f32 0.25, %v745_v13  ;;  %v1647_v16 = vpop.f32.mrb[7].mxu1  ;;  %v106_v14 = vld [vmem:[#allocation7 + $0x30] sm:$0xff] }
 0x143   :  { %v779_v17 = vsel %vm771_vm9, -inf, %v755_v12 }
 0x144   :  { %v780_v18 = vsel %vm772_vm10, -inf, %v756_v15  ;;  %v799_v19 = vsel %vm116_vm1, %v779_v17, -inf  ;;  %v107_v15 = vld [vmem:[#allocation7 + $0x38] sm:$0xff] }
 0x145   :  { %v802_v20 = vsel %vm116_vm1, %v780_v18, -inf  ;;  %800 = vmax.xlane.f32.xlu0 %v799_v19 }
 0x146   :  { %803 = vmax.xlane.f32.xlu1 %v802_v20  ;;  %v108_v20 = vld [vmem:[#allocation7 + $0x40] sm:$0xff] }
 0x1ba   :  { %v783_v21 = vpop.xlane.xlu0 %782 }
 0x1bb   :  { %v805_v22 = vsub.f32 %v773_v43, %v783_v21  ;;  %v109_v21 = vld [vmem:[#allocation7 + $0x48] sm:$0xff] }
 0x1bd   :  { %v813_v23 = vmul.f32 1.442695, %v805_v22 }
 0x1be   :  { %v786_v24 = vpop.xlane.xlu0 %785 }
 0x1bf   :  { %1771 = vpow2.f32 %v813_v23  ;;  %v806_v25 = vsub.f32 %v774_v45, %v786_v24  ;;  %v1749_v24 = vpack.c.bf16 %v109_v21, %v108_v20 }
 0x1c1   :  { %v815_v26 = vmul.f32 1.442695, %v806_v25 }
 0x1c2   :  { %v789_v27 = vpop.xlane.xlu1 %788 }
 0x1c3   :  { %1773 = vpow2.f32 %v815_v26  ;;  %v807_v28 = vsub.f32 %v775_v55, %v789_v27  ;;  %v110_v26 = vld [vmem:[#allocation7 + $0x50] sm:$0xff]  ;;  %v111_v27 = vld [vmem:[#allocation7 + $0x58] sm:$0xff] }
 0x1c5   :  { %v817_v29 = vmul.f32 1.442695, %v807_v28 }
 0x1c6   :  { %v792_v30 = vpop.xlane.xlu1 %791 }
 0x1c7   :  { %1775 = vpow2.f32 %v817_v29  ;;  %v808_v31 = vsub.f32 %v776_v57, %v792_v30  ;;  %v1752_v29 = vpack.c.bf16 %v111_v27, %v110_v26 }
 0x1c9   :  { %v1772_v32 = vpop.eup %1771  ;;  %v819_v33 = vmul.f32 1.442695, %v808_v31 }
 0x1ca   :  { %v795_v34 = vpop.xlane.xlu0 %794  ;;  %v829_v35 = vsel %vm116_vm1, %v1772_v32, 0.0 }
 0x1cb   :  { %1777 = vpow2.f32 %v819_v33  ;;  %v798_v36 = vpop.xlane.xlu1 %797  ;;  %v809_v37 = vsub.f32 %v777_v5, %v795_v34  ;;  %830 = vadd.xlane.f32.xlu0 %v829_v35  ;;  %v113_v33 = vld [vmem:[#allocation7 + $0x68] sm:$0xff]  ;;  %v114_v35 = vld [vmem:[#allocation7 + $0x70] sm:$0xff] }
 0x1cc   :  { %v810_v38 = vsub.f32 %v778_v6, %v798_v36  ;;  %v115_v36 = vld [vmem:[#allocation7 + $0x78] sm:$0xff] }
 0x1cd   :  { %v2129_v39 = vpop.eup %1773  ;;  %v821_v40 = vmul.f32 1.442695, %v809_v37 }
 0x1ce   :  { %v823_v41 = vmul.f32 1.442695, %v810_v38  ;;  %v832_v42 = vsel %vm116_vm1, %v2129_v39, 0.0 }
 0x1cf   :  { %1779 = vpow2.f32 %v821_v40  ;;  %833 = vadd.xlane.f32.xlu1 %v832_v42 }
 0x1d0   :  { %1781 = vpow2.f32 %v823_v41  ;;  %v1758_v41 = vpack.c.bf16 %v115_v36, %v114_v35 }
 0x1d1   :  { %v2133_v43 = vpop.eup %1775 }
 0x1d2   :  { %v801_v44 = vpop.xlane.xlu0 %800  ;;  %v835_v45 = vsel %vm116_vm1, %v2133_v43, 0.0 }
 0x1d3   :  { %v804_v46 = vpop.xlane.xlu1 %803  ;;  %v811_v47 = vsub.f32 %v779_v17, %v801_v44  ;;  %836 = vadd.xlane.f32.xlu0 %v835_v45  ;;  %v1746_v17 = vpack.c.bf16 %v107_v15, %v106_v14 }
 0x1d4   :  { %v812_v48 = vsub.f32 %v780_v18, %v804_v46 }
 0x1d5   :  { %v2137_v49 = vpop.eup %1777  ;;  %v825_v50 = vmul.f32 1.442695, %v811_v47 }
 0x1d6   :  { %v827_v51 = vmul.f32 1.442695, %v812_v48  ;;  %v838_v52 = vsel %vm116_vm1, %v2137_v49, 0.0 }
 0x1d7   :  { %1783 = vpow2.f32 %v825_v50  ;;  %839 = vadd.xlane.f32.xlu1 %v838_v52 }
 0x1d8   :  { %1785 = vpow2.f32 %v827_v51 }
 0x1d9   :  { %v2141_v53 = vpop.eup %1779 }
 0x1da   :  { %v2143_v54 = vpop.eup %1781  ;;  %v841_v55 = vsel %vm116_vm1, %v2141_v53, 0.0 }
 0x1db   :  { %v844_v56 = vsel %vm116_vm1, %v2143_v54, 0.0  ;;  %842 = vadd.xlane.f32.xlu0 %v841_v55 }
 0x1dc   :  { %845 = vadd.xlane.f32.xlu1 %v844_v56 }
 0x1e1   :  { %v2149_v57 = vpop.eup %1783 }
 0x1e2   :  { %v2151_v60 = vpop.eup %1785  ;;  %v847_v61 = vsel %vm116_vm1, %v2149_v57, 0.0 }
 0x1e3   :  { %v850_v63 = vsel %vm116_vm1, %v2151_v60, 0.0  ;;  %848 = vadd.xlane.f32.xlu0 %v847_v61 }
 0x1e4   :  { %851 = vadd.xlane.f32.xlu1 %v850_v63 }
 0x258   :  { %v831_v5 = vpop.xlane.xlu0 %830 }
 0x259   :  { %1787 = vrcp.f32 %v831_v5 }
 0x25c   :  { %v834_v6 = vpop.xlane.xlu1 %833 }
 0x25d   :  { %1789 = vrcp.f32 %v834_v6 }
 0x260   :  { %v837_v7 = vpop.xlane.xlu0 %836 }
 0x261   :  { %1791 = vrcp.f32 %v837_v7 }
 0x263   :  { %v1788_v10 = vpop.eup %1787 }
 0x264   :  { %v869_v12 = vmul.f32 %v1788_v10, %v1772_v32  ;;  %v840_v13 = vpop.xlane.xlu1 %839  ;;  %v112_v32 = vld [vmem:[#allocation7 + $0x60] sm:$0xff] }
 0x265   :  { %1793 = vrcp.f32 %v840_v13  ;;  %v1755_v38 = vpack.c.bf16 %v113_v33, %v112_v32 }
 0x266   :  { %877 = vst.msk [vmem:[#allocation11] sm:$0xff] %vm116_vm1, %v869_v12  ;;  %1653 = vmatmul.mubr.msk.f32.vlgmr.msra.gmra.mrb[8].mxu0 %vm116_vm1, %v869_v12 }
 0x267   :  { %v1790_v16 = vpop.eup %1789  ;;  %1744 = vmatpush3.bf16.msra.mxu0 %v1743_v11  ;;  %1666 = vmatprep.mubr.msk.f32.mxu0 %vm1952_vm0, %v1953_v1 }
 0x268   :  { %v870_v18 = vmul.f32 %v1790_v16, %v2129_v39  ;;  %v843_v19 = vpop.xlane.xlu0 %842  ;;  %1748 = vmatprep.subr.bf16.mxu0 %v1951_v0 }
 0x269   :  { %v846_v22 = vpop.xlane.xlu1 %845  ;;  %1795 = vrcp.f32 %v843_v19 }
 0x26a   :  { %878 = vst.msk [vmem:[#allocation11 + $0x8] sm:$0xff] %vm116_vm1, %v870_v18  ;;  %1797 = vrcp.f32 %v846_v22  ;;  %1660 = vmatmul.mubr.msk.f32.vlgmr.msra.gmra.mrb[8].mxu1 %vm116_vm1, %v870_v18 }
 0x26b   :  { %v1792_v23 = vpop.eup %1791  ;;  %1747 = vmatpush3.bf16.msra.mxu1 %v1746_v17  ;;  %1673 = vmatprep.mubr.msk.f32.mxu1 %vm1952_vm0, %v1953_v1 }
 0x26c   :  { %v871_v25 = vmul.f32 %v1792_v23, %v2133_v43  ;;  %1751 = vmatprep.subr.bf16.mxu1 %v1951_v0 }
 0x26e   :  { %879 = vst.msk [vmem:[#allocation11 + $0x10] sm:$0xff] %vm116_vm1, %v871_v25  ;;  %1667 = vmatmul.mubr.msk.f32.vlgmr.msra.gmra.mrb[10].mxu0 %vm116_vm1, %v871_v25 }
 0x26f   :  { %v1794_v28 = vpop.eup %1793  ;;  %1750 = vmatpush3.bf16.msra.mxu0 %v1749_v24  ;;  %1680 = vmatprep.mubr.msk.f32.mxu0 %vm1952_vm0, %v1953_v1 }
 0x270   :  { %v872_v30 = vmul.f32 %v1794_v28, %v2137_v49  ;;  %v849_v31 = vpop.xlane.xlu0 %848  ;;  %1754 = vmatprep.subr.bf16.mxu0 %v1951_v0 }
 0x271   :  { %v852_v34 = vpop.xlane.xlu1 %851  ;;  %1799 = vrcp.f32 %v849_v31 }
 0x272   :  { %880 = vst.msk [vmem:[#allocation11 + $0x18] sm:$0xff] %vm116_vm1, %v872_v30  ;;  %1801 = vrcp.f32 %v852_v34  ;;  %1674 = vmatmul.mubr.msk.f32.vlgmr.msra.gmra.mrb[10].mxu1 %vm116_vm1, %v872_v30 }
 0x273   :  { %v1796_v37 = vpop.eup %1795  ;;  %1753 = vmatpush3.bf16.msra.mxu1 %v1752_v29  ;;  %1687 = vmatprep.mubr.msk.f32.mxu1 %vm1952_vm0, %v1953_v1 }
 0x274   :  { %v1798_v39 = vpop.eup %1797  ;;  %v873_v40 = vmul.f32 %v1796_v37, %v2141_v53  ;;  %1757 = vmatprep.subr.bf16.mxu1 %v1951_v0 }
 0x275   :  { %v874_v42 = vmul.f32 %v1798_v39, %v2143_v54 }
 0x276   :  { %881 = vst.msk [vmem:[#allocation11 + $0x20] sm:$0xff] %vm116_vm1, %v873_v40  ;;  %1681 = vmatmul.mubr.msk.f32.vlgmr.msra.gmra.mrb[12].mxu0 %vm116_vm1, %v873_v40 }
 0x277   :  { %882 = vst.msk [vmem:[#allocation11 + $0x28] sm:$0xff] %vm116_vm1, %v874_v42  ;;  %1688 = vmatmul.mubr.msk.f32.vlgmr.msra.gmra.mrb[12].mxu1 %vm116_vm1, %v874_v42  ;;  %1756 = vmatpush3.bf16.msra.mxu0 %v1755_v38 }
 0x278   :  { %1759 = vmatpush3.bf16.msra.mxu1 %v1758_v41  ;;  %1694 = vmatprep.mubr.msk.f32.mxu0 %vm1952_vm0, %v1953_v1 }
 0x279   :  { %1701 = vmatprep.mubr.msk.f32.mxu1 %vm1952_vm0, %v1953_v1 }
 0x27b   :  { %v1800_v0 = vpop.eup %1799 }
 0x27c   :  { %v1802_v43 = vpop.eup %1801  ;;  %v875_v44 = vmul.f32 %v1800_v0, %v2149_v57 }
 0x27d   :  { %v876_v45 = vmul.f32 %v1802_v43, %v2151_v60 }
 0x27e   :  { %883 = vst.msk [vmem:[#allocation11 + $0x30] sm:$0xff] %vm116_vm1, %v875_v44  ;;  %1695 = vmatmul.mubr.msk.f32.vlgmr.msra.gmra.mrb[14].mxu0 %vm116_vm1, %v875_v44 }
 0x27f   :  { %884 = vst.msk [vmem:[#allocation11 + $0x38] sm:$0xff] %vm116_vm1, %v876_v45  ;;  %1702 = vmatmul.mubr.msk.f32.vlgmr.msra.gmra.mrb[14].mxu1 %vm116_vm1, %v876_v45 }
 0x280   :  { %1902 = shalt.err (!%p1899_p8)
}
 0x281   :  { %s1903_s20 = scalar_lea.hbm %s2241_s5, 1024 }
 0x282   :  { %p1904_p9 = scmp.ne.s32.totalorder %s2241_s5, %s1903_s20  ;;  %p1907_p10 = scmp.lt.u32.totalorder %s1903_s20, %s2241_s5 }
 0x284   :  { %p1909_p11 = pnand %p1907_p10, %p1904_p9 }
 0x286   :  { %1912 = shalt.err (!%p1909_p11)
}
 0x287   :  { %1500 = dma.vmem_to_hbm [thread:$0]  %s1495_s1, 1024, %s2241_s5, [#allocation12], %s1947_s30, %s1947_s30, %s1948_s6  }
 0x288   :  { %s1955_s5 = smov [#allocation10]  }
 0x289   :  { %s1482_s28 = sshll.u32 %s1955_s5, 4  ;;  %s1483_s28 = int_to_ptr.vmem [resolvable:$true] %s1482_s28 }
 0x28a   :  { %s1913_s29 = scalar_lea.vmem %s1483_s28, 1024  ;;  %p1918_p13 = scmp.lt.s32.totalorder %s1483_s28, %s1483_s28 }
 0x28b   :  { %p1914_p12 = scmp.ne.s32.totalorder %s1483_s28, %s1913_s29  ;;  %p1919_p0 = scmp.lt.s32.totalorder %s1913_s29, %s1913_s29 }
 0x28d   :  { %p1920_p1 = por %p1919_p0, %p1918_p13 }
 0x28f   :  { %p1921_p2 = pnand %p1920_p1, %p1914_p12 }
 0x339   :  { %v954_v1 = vpop.f32.mrb[8].mxu0 }
 0x33a   :  { %1469 = vst.msk [vmem:[#allocation10] sm:$0xff] %vm116_vm1, %v954_v1  ;;  %v1654_v46 = vpop.f32.mrb[9].mxu0 }
 0x33d   :  { %v1027_v47 = vpop.f32.mrb[8].mxu1 }
 0x33e   :  { %1470 = vst.msk [vmem:[#allocation10 + $0x8] sm:$0xff] %vm116_vm1, %v1027_v47  ;;  %v1661_v48 = vpop.f32.mrb[9].mxu1 }
 0x341   :  { %v1100_v49 = vpop.f32.mrb[10].mxu0 }
 0x342   :  { %1471 = vst.msk [vmem:[#allocation10 + $0x10] sm:$0xff] %vm116_vm1, %v1100_v49  ;;  %v1668_v50 = vpop.f32.mrb[11].mxu0 }
 0x345   :  { %v1173_v51 = vpop.f32.mrb[10].mxu1 }
 0x346   :  { %1472 = vst.msk [vmem:[#allocation10 + $0x18] sm:$0xff] %vm116_vm1, %v1173_v51  ;;  %v1675_v52 = vpop.f32.mrb[11].mxu1 }
 0x349   :  { %v1246_v53 = vpop.f32.mrb[12].mxu0 }
 0x34a   :  { %1473 = vst.msk [vmem:[#allocation10 + $0x20] sm:$0xff] %vm116_vm1, %v1246_v53  ;;  %v1319_v54 = vpop.f32.mrb[12].mxu1  ;;  %v1682_v55 = vpop.f32.mrb[13].mxu0 }
 0x34b   :  { %1474 = vst.msk [vmem:[#allocation10 + $0x28] sm:$0xff] %vm116_vm1, %v1319_v54  ;;  %v1689_v56 = vpop.f32.mrb[13].mxu1 }
 0x351   :  { %v1392_v57 = vpop.f32.mrb[14].mxu0 }
 0x352   :  { %1475 = vst.msk [vmem:[#allocation10 + $0x30] sm:$0xff] %vm116_vm1, %v1392_v57  ;;  %v1465_v58 = vpop.f32.mrb[14].mxu1  ;;  %v1696_v59 = vpop.f32.mrb[15].mxu0 }
 0x353   :  { %1476 = vst.msk [vmem:[#allocation10 + $0x38] sm:$0xff] %vm116_vm1, %v1465_v58  ;;  %v1703_v60 = vpop.f32.mrb[15].mxu1 }
 0x354   :  { %1924 = shalt.err (!%p1921_p2)
}
 0x355   :  { %s1925_s7 = scalar_lea.hbm %s2240_s4, 1024 }
 0x356   :  { %p1926_p3 = scmp.ne.s32.totalorder %s2240_s4, %s1925_s7  ;;  %p1929_p4 = scmp.lt.u32.totalorder %s1925_s7, %s2240_s4 }
 0x358   :  { %p1931_p5 = pnand %p1929_p4, %p1926_p3 }
 0x35a   :  { %1934 = shalt.err (!%p1931_p5)
}
 0x35b   :  { %1488 = dma.vmem_to_hbm [thread:$0]  %s1483_s28, 1024, %s2240_s4, [#allocation4], %s1947_s30, %s1947_s30, %s1948_s6  }
 0x35c   :  { %1941 = dma.done.wait [#allocation4], 1024  }
 0x35d   :  { %1942 = vsyncadd [#allocation4], 4294966272 }
 0x35e   :  { %1943 = dma.done.wait [#allocation12], 1024  }
 0x35f   :  { %1944 = vsyncadd [#allocation12], 4294966272 }
 0x360   :  { %1507 = vsyncpa [#allocation3], 1 }
 0x361   :  { %1508 = vsyncpa [#allocation6], 1 }
 0x362   :  { %1509 = vsyncpa [#allocation9], 1 }
 0x363   :  { %1510 = vsyncpa [#allocation4], 1 }
 0x364   :  { %1511 = vsyncpa [#allocation12], 1 }

</bundles_post_ra>
